<compile_context>
chip_gen: v7x
topology: tpu7x:2x2x1
jax: 0.10.0
libtpu: 0.0.40
codegen_flags: <defaults>
</compile_context>

<pallas_src>
import numpy as np
import jax
import jax.numpy as jnp
from jax import lax
from jax.experimental import pallas as pl
from jax.experimental.pallas import tpu as pltpu

_A = -0.75      # torch bicubic convolution coefficient
_LANE = 128     # TPU lane width


# ----------------------------------------------------------------------------
# Bicubic interpolation weight matrices (match torch upsample_bicubic2d,
# align_corners=False, antialias=False).
# ----------------------------------------------------------------------------
def _cubic_weights(t):
    """Weights for taps at offsets (-1, 0, 1, 2)."""
    def c1(x, A=_A):          # |x| <= 1
        return ((A + 2.0) * x - (A + 3.0)) * x * x + 1.0

    def c2(x, A=_A):          # 1 < |x| < 2
        return ((A * x - 5.0 * A) * x + 8.0 * A) * x - 4.0 * A

    return np.stack([c2(t + 1.0), c1(t), c1(1.0 - t), c2(2.0 - t)], axis=-1)


def bicubic_weight_matrix(in_size, out_size):
    """Dense (out_size, in_size) matrix reproducing torch bicubic resize along one axis."""
    scale = in_size / out_size
    out = np.arange(out_size, dtype=np.float64)
    src = (out + 0.5) * scale - 0.5
    idx0 = np.floor(src).astype(np.int64)
    t = src - idx0
    w = _cubic_weights(t)                               # (out, 4)
    W = np.zeros((out_size, in_size), dtype=np.float64)
    rows = np.arange(out_size)
    for k in range(4):
        cols = np.clip(idx0 + (k - 1), 0, in_size - 1)  # border clamp (accumulate)
        np.add.at(W, (rows, cols), w[:, k])
    return W.astype(np.float32)


# ----------------------------------------------------------------------------
# Pallas kernel
# ----------------------------------------------------------------------------
def _make_kernel(B, contract_h_first):
    """Kernel processing B (n,c) slabs per grid step with two MXU matmuls each."""

    def kernel(wh_ref, x_ref, wwt_ref, o_ref):
        # wh_ref : (S, H)    bf16 row-interp weights, cropped to the S output rows
        # x_ref  : (B, H, W) bf16 image slabs
        # wwt_ref: (W, Sp)   bf16 col-interp weights^T, cropped + zero-padded to Sp
        # o_ref  : (B, S, Sp) lane-dense output (Sp % 128 == 0)
        wh = wh_ref[...]
        wwt = wwt_ref[...]
        for b in range(B):  # B is a small trace-time constant (<= 8)
            xb = x_ref[b]                                    # (H, W)
            if contract_h_first:
                tmp = jnp.dot(wh, xb, preferred_element_type=jnp.float32)
                tmp = tmp.astype(jnp.bfloat16)               # (S, W)
                ob = jnp.dot(tmp, wwt, preferred_element_type=jnp.float32)
            else:
                tmp = jnp.dot(xb, wwt, preferred_element_type=jnp.float32)
                tmp = tmp.astype(jnp.bfloat16)               # (H, Sp)
                ob = jnp.dot(wh, tmp, preferred_element_type=jnp.float32)
            o_ref[b] = ob.astype(o_ref.dtype)                # (S, Sp)

    return kernel


def _pick_batch(nc, h, w, s, sp, in_item, out_item,
                vmem_budget_bytes=12 * 1024 * 1024):
    """Largest divisor of nc (capped at 8) whose double-buffered in+out tiles fit."""
    per_b = 2 * (h * w * in_item) + 2 * (s * sp * out_item)
    bmax = max(1, vmem_budget_bytes // max(per_b, 1))
    bmax = int(min(bmax, 8, nc))
    for b in range(bmax, 0, -1):
        if nc % b == 0:
            return b
    return 1


# ----------------------------------------------------------------------------
# Wrapper (jittable; min_size must be static)
# ----------------------------------------------------------------------------
def resize_crop_min_size(img, min_size, crop_key):
    """JAX/Pallas equivalent of ResizeCropMinSize.forward for NCHW tensors.

    RandomCrop offsets are drawn deterministically on-device from `crop_key`
    (the PyTorch module draws them from torch's global RNG)."""
    N, C, H, W = img.shape
    S = int(min_size)
    scale = S / float(min(H, W))
    if scale == 1.0:
        # torch: both resize and crop are skipped when scale == 1.0
        return img

    new_h = int(round(H * scale))
    new_w = int(round(W * scale))
    assert new_h >= S and new_w >= S  # no-pad case of RandomCrop (always holds)

    Wh = bicubic_weight_matrix(H, new_h)   # (new_h, H)
    Ww = bicubic_weight_matrix(W, new_w)   # (new_w, W)

    # RandomCrop((S, S)) offsets, on-device (no host sync, jit-friendly).
    kt, kl = jax.random.split(crop_key)
    top = jax.random.randint(kt, (), 0, new_h - S + 1)
    left = jax.random.randint(kl, (), 0, new_w - S + 1)

    cdt = jnp.bfloat16
    wh_full = jnp.asarray(Wh, dtype=cdt)                        # (new_h, H)
    ww_full = jnp.asarray(Ww, dtype=cdt)                        # (new_w, W)
    wh_c = lax.dynamic_slice_in_dim(wh_full, top, S, axis=0)    # (S, H)
    ww_c = lax.dynamic_slice_in_dim(ww_full, left, S, axis=0)   # (S, W)

    # Lane-dense output: pad the cropped-column dim up to a multiple of 128
    # with zero weight columns; slice the padding off after the kernel
    # (a no-op the compiler removes when S is already a multiple of 128).
    Sp = ((S + _LANE - 1) // _LANE) * _LANE
    wwt_c = jnp.pad(ww_c.T, ((0, 0), (0, Sp - S)))              # (W, Sp)

    NC = N * C
    # bf16 image -> half the HBM->VMEM DMA bytes (under jit this cast typically
    # fuses with the producer of `img`).
    x = img.reshape(NC, H, W).astype(cdt)

    # Output dtype: keep low-precision floats low-precision (halves writeback
    # DMA); everything else accumulates/writes in f32 and is cast afterwards.
    if img.dtype in (jnp.bfloat16, jnp.float16):
        out_dtype = jnp.bfloat16
    else:
        out_dtype = jnp.float32
    out_item = jnp.dtype(out_dtype).itemsize
    in_item = jnp.dtype(cdt).itemsize

    B = _pick_batch(NC, H, W, S, Sp, in_item, out_item)

    # Trace-time contraction-order choice (minimize MXU FLOPs per slab).
    flops_hfirst = 2 * S * H * W + 2 * S * W * Sp
    flops_wfirst = 2 * H * W * Sp + 2 * S * H * Sp
    contract_h_first = flops_hfirst <= flops_wfirst
    flops_total = NC * (flops_hfirst if contract_h_first else flops_wfirst)
    bytes_acc = (NC * H * W * in_item) + (S * H * in_item) + (W * Sp * in_item) \
                + (NC * S * Sp * out_item)

    kernel = _make_kernel(B, contract_h_first)

    out = pl.pallas_call(
        kernel,
        out_shape=jax.ShapeDtypeStruct((NC, S, Sp), out_dtype),
        grid_spec=pltpu.PrefetchScalarGridSpec(
            num_scalar_prefetch=0,
            grid=(NC // B,),
            in_specs=[
                pl.BlockSpec((S, H), lambda i: (0, 0)),        # resident weights
                pl.BlockSpec((B, H, W), lambda i: (i, 0, 0)),  # B slabs / step
                pl.BlockSpec((W, Sp), lambda i: (0, 0)),       # resident weights
            ],
            out_specs=pl.BlockSpec((B, S, Sp), lambda i: (i, 0, 0)),
        ),
        compiler_params=pltpu.CompilerParams(
            dimension_semantics=("parallel",),
            vmem_limit_bytes=32 * 1024 * 1024,
        ),
        cost_estimate=pl.CostEstimate(
            flops=int(flops_total), transcendentals=0,
            bytes_accessed=int(bytes_acc)),
    )(wh_c, x, wwt_c)

    out = out[:, :, :S].reshape(N, C, S, S)
    if jnp.issubdtype(img.dtype, jnp.integer):
        info = jnp.iinfo(img.dtype)
        out = jnp.clip(jnp.round(out.astype(jnp.float32)), info.min, info.max)
    return out.astype(img.dtype)


# ----------------------------------------------------------------------------
# Self-test
# ----------------------------------------------------------------------------
if __name__ == "__main__":
    key = jax.random.PRNGKey(0)
    k_img, k_crop = jax.random.split(key)

    # Small shapes: batch=2, channels=4, H=20, W=16, min_size=12 -> scale=0.75
    N, C, H, W = 2, 4, 20, 16
    MIN_SIZE = 12
    img = jax.random.normal(k_img, (N, C, H, W), dtype=jnp.float32)

    fn = jax.jit(resize_crop_min_size, static_argnums=1)
    out = jax.block_until_ready(fn(img, MIN_SIZE, k_crop))
    assert out.shape == (N, C, MIN_SIZE, MIN_SIZE), out.shape
    assert out.dtype == img.dtype

    # Reference: separable resize+crop built from the same (bf16-quantized)
    # weight matrices and image, evaluated exactly in float64.
    scale = MIN_SIZE / float(min(H, W))
    new_h, new_w = int(round(H * scale)), int(round(W * scale))
    kt, kl = jax.random.split(k_crop)
    top = int(jax.random.randint(kt, (), 0, new_h - MIN_SIZE + 1))
    left = int(jax.random.randint(kl, (), 0, new_w - MIN_SIZE + 1))
    Wh = bicubic_weight_matrix(H, new_h)
    Ww = bicubic_weight_matrix(W, new_w)
    whq = np.asarray(jnp.asarray(Wh, jnp.bfloat16).astype(jnp.float32),
                     dtype=np.float64)
    wwq = np.asarray(jnp.asarray(Ww, jnp.bfloat16).astype(jnp.float32),
                     dtype=np.float64)
    xq = np.asarray(img.astype(jnp.bfloat16).astype(jnp.float32),
                    dtype=np.float64)
    ref = np.einsum("sh,nchw,tw->ncst",
                    whq[top:top + MIN_SIZE], xq, wwq[left:left + MIN_SIZE])
    np.testing.assert_allclose(np.asarray(out, dtype=np.float64), ref,
                               rtol=5e-2, atol=5e-2)

    # Identity path (scale == 1.0) must return the input untouched.
    img_sq = jax.random.normal(k_img, (1, 3, MIN_SIZE, MIN_SIZE), jnp.float32)
    out_sq = jax.block_until_ready(
        jax.jit(resize_crop_min_size, static_argnums=1)(img_sq, MIN_SIZE, k_crop))
    np.testing.assert_array_equal(np.asarray(out_sq), np.asarray(img_sq))

    print("KERNEL_OK")
</pallas_src>

<mosaic_0001>
module attributes {stable_mosaic.version = 11 : i64} {
  func.func @kernel(%arg0: i32, %arg1: memref<12x20xbf16, #tpu.memory_space<vmem>>, %arg2: memref<8x20x16xbf16, #tpu.memory_space<vmem>>, %arg3: memref<16x128xbf16, #tpu.memory_space<vmem>>, %arg4: memref<8x12x128xf32, #tpu.memory_space<vmem>>) attributes {dimension_semantics = [#tpu.dimension_semantics<parallel>], iteration_bounds = array<i64: 1>, scalar_prefetch = 0 : i64, scratch_operands = 0 : i64, tpu.core_type = #tpu.core_type<tc>, window_params = [{pipeline_mode = #tpu.pipeline_mode<synchronous>, transform_indices = @transform_0, window_bounds = array<i64: 12, 20>}, {transform_indices = @transform_1, window_bounds = array<i64: 8, 20, 16>}, {pipeline_mode = #tpu.pipeline_mode<synchronous>, transform_indices = @transform_2, window_bounds = array<i64: 16, 128>}, {transform_indices = @transform_3, window_bounds = array<i64: 8, 12, 128>}]} {
    %c0 = arith.constant 0 : index
    %c0_0 = arith.constant 0 : index
    %0 = vector.load %arg1[%c0, %c0_0] : memref<12x20xbf16, #tpu.memory_space<vmem>>, vector<12x20xbf16>
    %c0_1 = arith.constant 0 : index
    %c0_2 = arith.constant 0 : index
    %1 = vector.load %arg3[%c0_1, %c0_2] : memref<16x128xbf16, #tpu.memory_space<vmem>>, vector<16x128xbf16>
    %c0_3 = arith.constant 0 : index
    %c0_4 = arith.constant 0 : index
    %c0_5 = arith.constant 0 : index
    %2 = vector.load %arg2[%c0_3, %c0_4, %c0_5] : memref<8x20x16xbf16, #tpu.memory_space<vmem>>, vector<1x20x16xbf16>
    %3 = vector.shape_cast %2 : vector<1x20x16xbf16> to vector<20x16xbf16>
    %cst = arith.constant dense<0.000000e+00> : vector<12x16xf32>
    %4 = tpu.matmul %0, %3, %cst {dimension_numbers = #tpu.dot_dimension_numbers<[1], [0], [0], [1], [0, 0, 1, 1], [], []>} : vector<12x20xbf16>, vector<20x16xbf16>, vector<12x16xf32> -> vector<12x16xf32>
    %5 = arith.truncf %4 : vector<12x16xf32> to vector<12x16xbf16>
    %cst_6 = arith.constant dense<0.000000e+00> : vector<12x128xf32>
    %6 = tpu.matmul %5, %1, %cst_6 {dimension_numbers = #tpu.dot_dimension_numbers<[1], [0], [0], [1], [0, 0, 1, 1], [], []>} : vector<12x16xbf16>, vector<16x128xbf16>, vector<12x128xf32> -> vector<12x128xf32>
    %c0_7 = arith.constant 0 : index
    %c0_8 = arith.constant 0 : index
    %c0_9 = arith.constant 0 : index
    %7 = vector.load %arg4[%c0_7, %c0_8, %c0_9] : memref<8x12x128xf32, #tpu.memory_space<vmem>>, vector<1x12x128xf32>
    %8 = vector.shape_cast %7 : vector<1x12x128xf32> to vector<12x128xf32>
    %9 = vector.shape_cast %6 : vector<12x128xf32> to vector<1x12x128xf32>
    tpu.vector_store %arg4[%c0_7, %c0_8, %c0_9], %9 {strides = array<i32>} : memref<8x12x128xf32, #tpu.memory_space<vmem>>, vector<1x12x128xf32>,
    %c1 = arith.constant 1 : index
    %c0_10 = arith.constant 0 : index
    %c0_11 = arith.constant 0 : index
    %10 = vector.load %arg2[%c1, %c0_10, %c0_11] : memref<8x20x16xbf16, #tpu.memory_space<vmem>>, vector<1x20x16xbf16>
    %11 = vector.shape_cast %10 : vector<1x20x16xbf16> to vector<20x16xbf16>
    %cst_12 = arith.constant dense<0.000000e+00> : vector<12x16xf32>
    %12 = tpu.matmul %0, %11, %cst_12 {dimension_numbers = #tpu.dot_dimension_numbers<[1], [0], [0], [1], [0, 0, 1, 1], [], []>} : vector<12x20xbf16>, vector<20x16xbf16>, vector<12x16xf32> -> vector<12x16xf32>
    %13 = arith.truncf %12 : vector<12x16xf32> to vector<12x16xbf16>
    %cst_13 = arith.constant dense<0.000000e+00> : vector<12x128xf32>
    %14 = tpu.matmul %13, %1, %cst_13 {dimension_numbers = #tpu.dot_dimension_numbers<[1], [0], [0], [1], [0, 0, 1, 1], [], []>} : vector<12x16xbf16>, vector<16x128xbf16>, vector<12x128xf32> -> vector<12x128xf32>
    %c1_14 = arith.constant 1 : index
    %c0_15 = arith.constant 0 : index
    %c0_16 = arith.constant 0 : index
    %15 = vector.load %arg4[%c1_14, %c0_15, %c0_16] : memref<8x12x128xf32, #tpu.memory_space<vmem>>, vector<1x12x128xf32>
    %16 = vector.shape_cast %15 : vector<1x12x128xf32> to vector<12x128xf32>
    %17 = vector.shape_cast %14 : vector<12x128xf32> to vector<1x12x128xf32>
    tpu.vector_store %arg4[%c1_14, %c0_15, %c0_16], %17 {strides = array<i32>} : memref<8x12x128xf32, #tpu.memory_space<vmem>>, vector<1x12x128xf32>,
    %c2 = arith.constant 2 : index
    %c0_17 = arith.constant 0 : index
    %c0_18 = arith.constant 0 : index
    %18 = vector.load %arg2[%c2, %c0_17, %c0_18] : memref<8x20x16xbf16, #tpu.memory_space<vmem>>, vector<1x20x16xbf16>
    %19 = vector.shape_cast %18 : vector<1x20x16xbf16> to vector<20x16xbf16>
    %cst_19 = arith.constant dense<0.000000e+00> : vector<12x16xf32>
    %20 = tpu.matmul %0, %19, %cst_19 {dimension_numbers = #tpu.dot_dimension_numbers<[1], [0], [0], [1], [0, 0, 1, 1], [], []>} : vector<12x20xbf16>, vector<20x16xbf16>, vector<12x16xf32> -> vector<12x16xf32>
    %21 = arith.truncf %20 : vector<12x16xf32> to vector<12x16xbf16>
    %cst_20 = arith.constant dense<0.000000e+00> : vector<12x128xf32>
    %22 = tpu.matmul %21, %1, %cst_20 {dimension_numbers = #tpu.dot_dimension_numbers<[1], [0], [0], [1], [0, 0, 1, 1], [], []>} : vector<12x16xbf16>, vector<16x128xbf16>, vector<12x128xf32> -> vector<12x128xf32>
    %c2_21 = arith.constant 2 : index
    %c0_22 = arith.constant 0 : index
    %c0_23 = arith.constant 0 : index
    %23 = vector.load %arg4[%c2_21, %c0_22, %c0_23] : memref<8x12x128xf32, #tpu.memory_space<vmem>>, vector<1x12x128xf32>
    %24 = vector.shape_cast %23 : vector<1x12x128xf32> to vector<12x128xf32>
    %25 = vector.shape_cast %22 : vector<12x128xf32> to vector<1x12x128xf32>
    tpu.vector_store %arg4[%c2_21, %c0_22, %c0_23], %25 {strides = array<i32>} : memref<8x12x128xf32, #tpu.memory_space<vmem>>, vector<1x12x128xf32>,
    %c3 = arith.constant 3 : index
    %c0_24 = arith.constant 0 : index
    %c0_25 = arith.constant 0 : index
    %26 = vector.load %arg2[%c3, %c0_24, %c0_25] : memref<8x20x16xbf16, #tpu.memory_space<vmem>>, vector<1x20x16xbf16>
    %27 = vector.shape_cast %26 : vector<1x20x16xbf16> to vector<20x16xbf16>
    %cst_26 = arith.constant dense<0.000000e+00> : vector<12x16xf32>
    %28 = tpu.matmul %0, %27, %cst_26 {dimension_numbers = #tpu.dot_dimension_numbers<[1], [0], [0], [1], [0, 0, 1, 1], [], []>} : vector<12x20xbf16>, vector<20x16xbf16>, vector<12x16xf32> -> vector<12x16xf32>
    %29 = arith.truncf %28 : vector<12x16xf32> to vector<12x16xbf16>
    %cst_27 = arith.constant dense<0.000000e+00> : vector<12x128xf32>
    %30 = tpu.matmul %29, %1, %cst_27 {dimension_numbers = #tpu.dot_dimension_numbers<[1], [0], [0], [1], [0, 0, 1, 1], [], []>} : vector<12x16xbf16>, vector<16x128xbf16>, vector<12x128xf32> -> vector<12x128xf32>
    %c3_28 = arith.constant 3 : index
    %c0_29 = arith.constant 0 : index
    %c0_30 = arith.constant 0 : index
    %31 = vector.load %arg4[%c3_28, %c0_29, %c0_30] : memref<8x12x128xf32, #tpu.memory_space<vmem>>, vector<1x12x128xf32>
    %32 = vector.shape_cast %31 : vector<1x12x128xf32> to vector<12x128xf32>
    %33 = vector.shape_cast %30 : vector<12x128xf32> to vector<1x12x128xf32>
    tpu.vector_store %arg4[%c3_28, %c0_29, %c0_30], %33 {strides = array<i32>} : memref<8x12x128xf32, #tpu.memory_space<vmem>>, vector<1x12x128xf32>,
    %c4 = arith.constant 4 : index
    %c0_31 = arith.constant 0 : index
    %c0_32 = arith.constant 0 : index
    %34 = vector.load %arg2[%c4, %c0_31, %c0_32] : memref<8x20x16xbf16, #tpu.memory_space<vmem>>, vector<1x20x16xbf16>
    %35 = vector.shape_cast %34 : vector<1x20x16xbf16> to vector<20x16xbf16>
    %cst_33 = arith.constant dense<0.000000e+00> : vector<12x16xf32>
    %36 = tpu.matmul %0, %35, %cst_33 {dimension_numbers = #tpu.dot_dimension_numbers<[1], [0], [0], [1], [0, 0, 1, 1], [], []>} : vector<12x20xbf16>, vector<20x16xbf16>, vector<12x16xf32> -> vector<12x16xf32>
    %37 = arith.truncf %36 : vector<12x16xf32> to vector<12x16xbf16>
    %cst_34 = arith.constant dense<0.000000e+00> : vector<12x128xf32>
    %38 = tpu.matmul %37, %1, %cst_34 {dimension_numbers = #tpu.dot_dimension_numbers<[1], [0], [0], [1], [0, 0, 1, 1], [], []>} : vector<12x16xbf16>, vector<16x128xbf16>, vector<12x128xf32> -> vector<12x128xf32>
    %c4_35 = arith.constant 4 : index
    %c0_36 = arith.constant 0 : index
    %c0_37 = arith.constant 0 : index
    %39 = vector.load %arg4[%c4_35, %c0_36, %c0_37] : memref<8x12x128xf32, #tpu.memory_space<vmem>>, vector<1x12x128xf32>
    %40 = vector.shape_cast %39 : vector<1x12x128xf32> to vector<12x128xf32>
    %41 = vector.shape_cast %38 : vector<12x128xf32> to vector<1x12x128xf32>
    tpu.vector_store %arg4[%c4_35, %c0_36, %c0_37], %41 {strides = array<i32>} : memref<8x12x128xf32, #tpu.memory_space<vmem>>, vector<1x12x128xf32>,
    %c5 = arith.constant 5 : index
    %c0_38 = arith.constant 0 : index
    %c0_39 = arith.constant 0 : index
    %42 = vector.load %arg2[%c5, %c0_38, %c0_39] : memref<8x20x16xbf16, #tpu.memory_space<vmem>>, vector<1x20x16xbf16>
    %43 = vector.shape_cast %42 : vector<1x20x16xbf16> to vector<20x16xbf16>
    %cst_40 = arith.constant dense<0.000000e+00> : vector<12x16xf32>
    %44 = tpu.matmul %0, %43, %cst_40 {dimension_numbers = #tpu.dot_dimension_numbers<[1], [0], [0], [1], [0, 0, 1, 1], [], []>} : vector<12x20xbf16>, vector<20x16xbf16>, vector<12x16xf32> -> vector<12x16xf32>
    %45 = arith.truncf %44 : vector<12x16xf32> to vector<12x16xbf16>
    %cst_41 = arith.constant dense<0.000000e+00> : vector<12x128xf32>
    %46 = tpu.matmul %45, %1, %cst_41 {dimension_numbers = #tpu.dot_dimension_numbers<[1], [0], [0], [1], [0, 0, 1, 1], [], []>} : vector<12x16xbf16>, vector<16x128xbf16>, vector<12x128xf32> -> vector<12x128xf32>
    %c5_42 = arith.constant 5 : index
    %c0_43 = arith.constant 0 : index
    %c0_44 = arith.constant 0 : index
    %47 = vector.load %arg4[%c5_42, %c0_43, %c0_44] : memref<8x12x128xf32, #tpu.memory_space<vmem>>, vector<1x12x128xf32>
    %48 = vector.shape_cast %47 : vector<1x12x128xf32> to vector<12x128xf32>
    %49 = vector.shape_cast %46 : vector<12x128xf32> to vector<1x12x128xf32>
    tpu.vector_store %arg4[%c5_42, %c0_43, %c0_44], %49 {strides = array<i32>} : memref<8x12x128xf32, #tpu.memory_space<vmem>>, vector<1x12x128xf32>,
    %c6 = arith.constant 6 : index
    %c0_45 = arith.constant 0 : index
    %c0_46 = arith.constant 0 : index
    %50 = vector.load %arg2[%c6, %c0_45, %c0_46] : memref<8x20x16xbf16, #tpu.memory_space<vmem>>, vector<1x20x16xbf16>
    %51 = vector.shape_cast %50 : vector<1x20x16xbf16> to vector<20x16xbf16>
    %cst_47 = arith.constant dense<0.000000e+00> : vector<12x16xf32>
    %52 = tpu.matmul %0, %51, %cst_47 {dimension_numbers = #tpu.dot_dimension_numbers<[1], [0], [0], [1], [0, 0, 1, 1], [], []>} : vector<12x20xbf16>, vector<20x16xbf16>, vector<12x16xf32> -> vector<12x16xf32>
    %53 = arith.truncf %52 : vector<12x16xf32> to vector<12x16xbf16>
    %cst_48 = arith.constant dense<0.000000e+00> : vector<12x128xf32>
    %54 = tpu.matmul %53, %1, %cst_48 {dimension_numbers = #tpu.dot_dimension_numbers<[1], [0], [0], [1], [0, 0, 1, 1], [], []>} : vector<12x16xbf16>, vector<16x128xbf16>, vector<12x128xf32> -> vector<12x128xf32>
    %c6_49 = arith.constant 6 : index
    %c0_50 = arith.constant 0 : index
    %c0_51 = arith.constant 0 : index
    %55 = vector.load %arg4[%c6_49, %c0_50, %c0_51] : memref<8x12x128xf32, #tpu.memory_space<vmem>>, vector<1x12x128xf32>
    %56 = vector.shape_cast %55 : vector<1x12x128xf32> to vector<12x128xf32>
    %57 = vector.shape_cast %54 : vector<12x128xf32> to vector<1x12x128xf32>
    tpu.vector_store %arg4[%c6_49, %c0_50, %c0_51], %57 {strides = array<i32>} : memref<8x12x128xf32, #tpu.memory_space<vmem>>, vector<1x12x128xf32>,
    %c7 = arith.constant 7 : index
    %c0_52 = arith.constant 0 : index
    %c0_53 = arith.constant 0 : index
    %58 = vector.load %arg2[%c7, %c0_52, %c0_53] : memref<8x20x16xbf16, #tpu.memory_space<vmem>>, vector<1x20x16xbf16>
    %59 = vector.shape_cast %58 : vector<1x20x16xbf16> to vector<20x16xbf16>
    %cst_54 = arith.constant dense<0.000000e+00> : vector<12x16xf32>
    %60 = tpu.matmul %0, %59, %cst_54 {dimension_numbers = #tpu.dot_dimension_numbers<[1], [0], [0], [1], [0, 0, 1, 1], [], []>} : vector<12x20xbf16>, vector<20x16xbf16>, vector<12x16xf32> -> vector<12x16xf32>
    %61 = arith.truncf %60 : vector<12x16xf32> to vector<12x16xbf16>
    %cst_55 = arith.constant dense<0.000000e+00> : vector<12x128xf32>
    %62 = tpu.matmul %61, %1, %cst_55 {dimension_numbers = #tpu.dot_dimension_numbers<[1], [0], [0], [1], [0, 0, 1, 1], [], []>} : vector<12x16xbf16>, vector<16x128xbf16>, vector<12x128xf32> -> vector<12x128xf32>
    %c7_56 = arith.constant 7 : index
    %c0_57 = arith.constant 0 : index
    %c0_58 = arith.constant 0 : index
    %63 = vector.load %arg4[%c7_56, %c0_57, %c0_58] : memref<8x12x128xf32, #tpu.memory_space<vmem>>, vector<1x12x128xf32>
    %64 = vector.shape_cast %63 : vector<1x12x128xf32> to vector<12x128xf32>
    %65 = vector.shape_cast %62 : vector<12x128xf32> to vector<1x12x128xf32>
    tpu.vector_store %arg4[%c7_56, %c0_57, %c0_58], %65 {strides = array<i32>} : memref<8x12x128xf32, #tpu.memory_space<vmem>>, vector<1x12x128xf32>,
    return
  }
  func.func @transform_0(%arg0: i32) -> (i32, i32) {
    %c0_i32 = arith.constant 0 : i32
    %c0_i32_0 = arith.constant 0 : i32
    %c0_i32_1 = arith.constant 0 : i32
    return %c0_i32, %c0_i32_0 : i32, i32
  }
  func.func @transform_1(%arg0: i32) -> (i32, i32, i32) {
    %c0_i32 = arith.constant 0 : i32
    %c0_i32_0 = arith.constant 0 : i32
    %c0_i32_1 = arith.constant 0 : i32
    return %arg0, %c0_i32, %c0_i32_0 : i32, i32, i32
  }
  func.func @transform_2(%arg0: i32) -> (i32, i32) {
    %c0_i32 = arith.constant 0 : i32
    %c0_i32_0 = arith.constant 0 : i32
    %c0_i32_1 = arith.constant 0 : i32
    return %c0_i32, %c0_i32_0 : i32, i32
  }
  func.func @transform_3(%arg0: i32) -> (i32, i32, i32) {
    %c0_i32 = arith.constant 0 : i32
    %c0_i32_0 = arith.constant 0 : i32
    %c0_i32_1 = arith.constant 0 : i32
    return %arg0, %c0_i32, %c0_i32_0 : i32, i32, i32
  }
}

</mosaic_0001>

<bundles_post_ra>
// kernel: resize_crop_min_size.1
= control target key start
LH: loop header
LB: loop body
LE: loop exit
PB: predicated region body
PF: predicated region fallthrough
CT: control target
= control target key end

     0   :  { %v1119_v0 = vmov 0.0   ;;  %vm40_vm0 = vcmask 1041408   ;;  %vm1120_vm1 = vmmov 0   ;;  %vm36_vm2 = vcmask 162816   ;;  %s1343_s1 = inlined_call_operand.vmem [shape: bf16[8,20,16], index: 1, kind: input, shape index: {}]   ;;  %s1344_s0 = inlined_call_operand.vmem [shape: bf16[12,20], index: 0, kind: input, shape index: {}]   ;;  %s1345_s2 = inlined_call_operand.vmem [shape: bf16[16,128], index: 2, kind: input, shape index: {}]   ;;  %s1346_s3 = inlined_call_operand.vmem [shape: f32[8,12,128], index: 3, kind: output, shape index: {}]  }
   0x1   :  { %987 = vmatprep.subr.bf16.mxu0 %v1119_v0  ;;  %v1101_v1 = vld [vmem:[%s1343_s1] sm:$0xff]   ;;  %991 = vmatprep.mubr.msk.bf16.mxu0 %vm1120_vm1, %v1119_v0  ;;  %v1102_v2 = vld [vmem:[%s1343_s1 + $0x8] ss:$0 sps:$4 sm:$0x33]   ;;  %vm92_vm3 = vcmask 130048   ;;  %v1105_v9 = vld [vmem:[%s1343_s1 + $0xc] sm:$0xff]  }
   0x2   :  { %995 = vmatprep.subr.bf16.mxu1 %v1119_v0  ;;  %997 = vmatprep.mubr.msk.bf16.mxu1 %vm1120_vm1, %v1119_v0  ;;  %v42_v3 = vsel %vm40_vm0, %v1102_v2, 0  ;;  %v1158_v4 = vld [vmem:[%s1344_s0] sm:$0x3f]   ;;  %v1106_v12 = vld [vmem:[%s1343_s1 + $0x14] ss:$0 sps:$4 sm:$0x33]  }
   0x3   :  { %988 = vmatpush3.bf16.msra.mxu0 %v1101_v1  ;;  %v1168_v5 = vld [vmem:[%s1345_s2] sm:$0xff]   ;;  %v153_v13 = vsel %vm40_vm0, %v1106_v12, 0  ;;  %v1107_v14 = vld [vmem:[%s1343_s1 + $0x18] sm:$0xff]   ;;  %v1110_v18 = vld [vmem:[%s1343_s1 + $0x2c] ss:$0 sps:$4 sm:$0x33]  }
   0x4   :  { %989 = vmatprep.subr.bf16.mxu0 %v1119_v0  ;;  %996 = vmatpush3.bf16.msra.mxu1 %v1168_v5  ;;  %v1108_v15 = vld [vmem:[%s1343_s1 + $0x20] ss:$0 sps:$4 sm:$0x33]   ;;  %v1109_v17 = vld [vmem:[%s1343_s1 + $0x24] sm:$0xff]   ;;  %v363_v19 = vsel %vm40_vm0, %v1110_v18, 0  ;;  %v1111_v20 = vld [vmem:[%s1343_s1 + $0x30] sm:$0xff]  }
   0x5   :  { %1001 = vmatprep.subr.bf16.mxu1 %v1119_v0  ;;  %v258_v16 = vsel %vm40_vm0, %v1108_v15, 0  ;;  %v1112_v21 = vld [vmem:[%s1343_s1 + $0x38] ss:$0 sps:$4 sm:$0x33]   ;;  %v1113_v23 = vld [vmem:[%s1343_s1 + $0x3c] sm:$0xff]   ;;  %v1115_v26 = vld [vmem:[%s1343_s1 + $0x48] sm:$0xff]  }
   0x6   :  { %v468_v22 = vsel %vm40_vm0, %v1112_v21, 0  ;;  %v1114_v24 = vld [vmem:[%s1343_s1 + $0x44] ss:$0 sps:$4 sm:$0x33]   ;;  %v1117_v29 = vld [vmem:[%s1343_s1 + $0x54] sm:$0xff]  }
   0x7   :  { %990 = vmatpush3.bf16.msra.mxu0 %v42_v3  ;;  %v573_v25 = vsel %vm40_vm0, %v1114_v24, 0  ;;  %v1116_v27 = vld [vmem:[%s1343_s1 + $0x50] ss:$0 sps:$4 sm:$0x33]  }
   0x8   :  { %1009 = vmatprep.subr.bf16.mxu0 %v1119_v0  ;;  %v678_v28 = vsel %vm40_vm0, %v1116_v27, 0  ;;  %v1118_v30 = vld [vmem:[%s1343_s1 + $0x5c] ss:$0 sps:$4 sm:$0x33]  }
   0x9   :  { %v783_v31 = vsel %vm40_vm0, %v1118_v30, 0 }
   0xa   :  { %992 = vmatmul.mubr.msk.bf16.vlgmr.msra.gmra.mrb[0].mxu0 %vm36_vm2, %v1158_v4 }
   0xb   :  { %1011 = vmatprep.mubr.msk.bf16.mxu0 %vm1120_vm1, %v1119_v0  ;;  %1010 = vmatpush3.bf16.msra.mxu0 %v1168_v5 }
   0xc   :  { %1023 = vmatprep.subr.bf16.mxu0 %v1119_v0 }
  0xdd   :  { %v78_v6 = vpop.f32.mrb[0].mxu0 }
  0xde   :  { %v993_v7 = vpop.f32.mrb[1].mxu0 }
  0xdf   :  { %v81_v8 = vpop.f32.mrb[2].mxu0 }
  0xe0   :  { %v85_v10 = vpack.c.bf16 %v81_v8, %v78_v6  ;;  %v994_v11 = vpop.f32.mrb[3].mxu0 }
  0xe2   :  { %998 = vmatmul.mubr.msk.bf16.vlgmr.msra.gmra.mrb[0].mxu1 %vm92_vm3, %v85_v10 }
  0xe3   :  { %1002 = vmatpush3.bf16.msra.mxu1 %v1105_v9  ;;  %1005 = vmatprep.mubr.msk.bf16.mxu1 %vm1120_vm1, %v1119_v0 }
  0xe4   :  { %1003 = vmatprep.subr.bf16.mxu1 %v1119_v0 }
  0xe7   :  { %1004 = vmatpush3.bf16.msra.mxu1 %v153_v13 }
  0xe8   :  { %1015 = vmatprep.subr.bf16.mxu1 %v1119_v0 }
  0xea   :  { %1006 = vmatmul.mubr.msk.bf16.vlgmr.msra.gmra.mrb[4].mxu1 %vm36_vm2, %v1158_v4 }
  0xeb   :  { %1016 = vmatpush3.bf16.msra.mxu1 %v1107_v14  ;;  %1019 = vmatprep.mubr.msk.bf16.mxu1 %vm1120_vm1, %v1119_v0 }
  0xec   :  { %1017 = vmatprep.subr.bf16.mxu1 %v1119_v0 }
  0xef   :  { %1018 = vmatpush3.bf16.msra.mxu1 %v258_v16 }
  0xf0   :  { %1029 = vmatprep.subr.bf16.mxu1 %v1119_v0 }
  0xf2   :  { %1020 = vmatmul.mubr.msk.bf16.vlgmr.msra.gmra.mrb[8].mxu1 %vm36_vm2, %v1158_v4 }
  0xf3   :  { %1030 = vmatpush3.bf16.msra.mxu1 %v1109_v17  ;;  %1033 = vmatprep.mubr.msk.bf16.mxu1 %vm1120_vm1, %v1119_v0 }
  0xf4   :  { %1031 = vmatprep.subr.bf16.mxu1 %v1119_v0 }
  0xf7   :  { %1032 = vmatpush3.bf16.msra.mxu1 %v363_v19 }
  0xf8   :  { %1043 = vmatprep.subr.bf16.mxu1 %v1119_v0 }
  0xfa   :  { %1034 = vmatmul.mubr.msk.bf16.vlgmr.msra.gmra.mrb[12].mxu1 %vm36_vm2, %v1158_v4 }
  0xfb   :  { %1044 = vmatpush3.bf16.msra.mxu1 %v1111_v20  ;;  %1047 = vmatprep.mubr.msk.bf16.mxu1 %vm1120_vm1, %v1119_v0 }
  0xfc   :  { %1045 = vmatprep.subr.bf16.mxu1 %v1119_v0 }
  0xff   :  { %1046 = vmatpush3.bf16.msra.mxu1 %v468_v22 }
 0x100   :  { %1057 = vmatprep.subr.bf16.mxu1 %v1119_v0 }
 0x102   :  { %1048 = vmatmul.mubr.msk.bf16.vlgmr.msra.gmra.mrb[16].mxu1 %vm36_vm2, %v1158_v4 }
 0x103   :  { %1058 = vmatpush3.bf16.msra.mxu1 %v1113_v23  ;;  %1061 = vmatprep.mubr.msk.bf16.mxu1 %vm1120_vm1, %v1119_v0 }
 0x104   :  { %1059 = vmatprep.subr.bf16.mxu1 %v1119_v0 }
 0x107   :  { %1060 = vmatpush3.bf16.msra.mxu1 %v573_v25 }
 0x108   :  { %1071 = vmatprep.subr.bf16.mxu1 %v1119_v0 }
 0x10a   :  { %1062 = vmatmul.mubr.msk.bf16.vlgmr.msra.gmra.mrb[20].mxu1 %vm36_vm2, %v1158_v4 }
 0x10b   :  { %1072 = vmatpush3.bf16.msra.mxu1 %v1115_v26  ;;  %1075 = vmatprep.mubr.msk.bf16.mxu1 %vm1120_vm1, %v1119_v0 }
 0x10c   :  { %1073 = vmatprep.subr.bf16.mxu1 %v1119_v0 }
 0x10f   :  { %1074 = vmatpush3.bf16.msra.mxu1 %v678_v28 }
 0x110   :  { %1085 = vmatprep.subr.bf16.mxu1 %v1119_v0 }
 0x112   :  { %1076 = vmatmul.mubr.msk.bf16.vlgmr.msra.gmra.mrb[24].mxu1 %vm36_vm2, %v1158_v4 }
 0x113   :  { %1086 = vmatpush3.bf16.msra.mxu1 %v1117_v29  ;;  %1089 = vmatprep.mubr.msk.bf16.mxu1 %vm1120_vm1, %v1119_v0 }
 0x114   :  { %1087 = vmatprep.subr.bf16.mxu1 %v1119_v0 }
 0x117   :  { %1088 = vmatpush3.bf16.msra.mxu1 %v783_v31 }
 0x11a   :  { %1090 = vmatmul.mubr.msk.bf16.vlgmr.msra.gmra.mrb[28].mxu1 %vm36_vm2, %v1158_v4 }
 0x1b5   :  { %v130_v32 = vpop.f32.mrb[0].mxu1 }
 0x1b6   :  { %137 = vst [vmem:[%s1346_s3] sm:$0xff] %v130_v32  ;;  %v999_v33 = vpop.f32.mrb[1].mxu1 }
 0x1b7   :  { %v133_v34 = vpop.f32.mrb[2].mxu1 }
 0x1b8   :  { %138 = vst [vmem:[%s1346_s3 + $0x8] sm:$0xf] %v133_v34  ;;  %v1000_v35 = vpop.f32.mrb[3].mxu1 }
 0x1bd   :  { %v189_v36 = vpop.f32.mrb[4].mxu1 }
 0x1be   :  { %v1007_v37 = vpop.f32.mrb[5].mxu1 }
 0x1bf   :  { %v192_v38 = vpop.f32.mrb[6].mxu1 }
 0x1c0   :  { %v196_v39 = vpack.c.bf16 %v192_v38, %v189_v36  ;;  %v1008_v40 = vpop.f32.mrb[7].mxu1 }
 0x1c2   :  { %1012 = vmatmul.mubr.msk.bf16.vlgmr.msra.gmra.mrb[4].mxu0 %vm92_vm3, %v196_v39 }
 0x1c3   :  { %1024 = vmatpush3.bf16.msra.mxu0 %v1168_v5  ;;  %1025 = vmatprep.mubr.msk.bf16.mxu0 %vm1120_vm1, %v1119_v0 }
 0x1c4   :  { %1037 = vmatprep.subr.bf16.mxu0 %v1119_v0 }
 0x1c5   :  { %v294_v41 = vpop.f32.mrb[8].mxu1 }
 0x1c6   :  { %v1021_v42 = vpop.f32.mrb[9].mxu1 }
 0x1c7   :  { %v297_v43 = vpop.f32.mrb[10].mxu1 }
 0x1c8   :  { %v301_v44 = vpack.c.bf16 %v297_v43, %v294_v41  ;;  %v1022_v45 = vpop.f32.mrb[11].mxu1 }
 0x1ca   :  { %1026 = vmatmul.mubr.msk.bf16.vlgmr.msra.gmra.mrb[8].mxu0 %vm92_vm3, %v301_v44 }
 0x1cb   :  { %1038 = vmatpush3.bf16.msra.mxu0 %v1168_v5  ;;  %1039 = vmatprep.mubr.msk.bf16.mxu0 %vm1120_vm1, %v1119_v0 }
 0x1cc   :  { %1051 = vmatprep.subr.bf16.mxu0 %v1119_v0 }
 0x1cd   :  { %v399_v46 = vpop.f32.mrb[12].mxu1 }
 0x1ce   :  { %v1035_v47 = vpop.f32.mrb[13].mxu1 }
 0x1cf   :  { %v402_v48 = vpop.f32.mrb[14].mxu1 }
 0x1d0   :  { %v406_v49 = vpack.c.bf16 %v402_v48, %v399_v46  ;;  %v1036_v50 = vpop.f32.mrb[15].mxu1 }
 0x1d2   :  { %1040 = vmatmul.mubr.msk.bf16.vlgmr.msra.gmra.mrb[12].mxu0 %vm92_vm3, %v406_v49 }
 0x1d3   :  { %1052 = vmatpush3.bf16.msra.mxu0 %v1168_v5  ;;  %1053 = vmatprep.mubr.msk.bf16.mxu0 %vm1120_vm1, %v1119_v0 }
 0x1d4   :  { %1065 = vmatprep.subr.bf16.mxu0 %v1119_v0 }
 0x1d5   :  { %v504_v51 = vpop.f32.mrb[16].mxu1 }
 0x1d6   :  { %v1049_v52 = vpop.f32.mrb[17].mxu1 }
 0x1d7   :  { %v507_v53 = vpop.f32.mrb[18].mxu1 }
 0x1d8   :  { %v511_v54 = vpack.c.bf16 %v507_v53, %v504_v51  ;;  %v1050_v55 = vpop.f32.mrb[19].mxu1 }
 0x1da   :  { %1054 = vmatmul.mubr.msk.bf16.vlgmr.msra.gmra.mrb[16].mxu0 %vm92_vm3, %v511_v54 }
 0x1db   :  { %1066 = vmatpush3.bf16.msra.mxu0 %v1168_v5  ;;  %1067 = vmatprep.mubr.msk.bf16.mxu0 %vm1120_vm1, %v1119_v0 }
 0x1dc   :  { %1079 = vmatprep.subr.bf16.mxu0 %v1119_v0 }
 0x1dd   :  { %v609_v56 = vpop.f32.mrb[20].mxu1 }
 0x1de   :  { %v1063_v57 = vpop.f32.mrb[21].mxu1 }
 0x1df   :  { %v612_v58 = vpop.f32.mrb[22].mxu1 }
 0x1e0   :  { %v616_v59 = vpack.c.bf16 %v612_v58, %v609_v56  ;;  %v1064_v60 = vpop.f32.mrb[23].mxu1 }
 0x1e2   :  { %1068 = vmatmul.mubr.msk.bf16.vlgmr.msra.gmra.mrb[20].mxu0 %vm92_vm3, %v616_v59 }
 0x1e3   :  { %1080 = vmatpush3.bf16.msra.mxu0 %v1168_v5  ;;  %1081 = vmatprep.mubr.msk.bf16.mxu0 %vm1120_vm1, %v1119_v0 }
 0x1e4   :  { %1093 = vmatprep.subr.bf16.mxu0 %v1119_v0 }
 0x1e5   :  { %v714_v61 = vpop.f32.mrb[24].mxu1 }
 0x1e6   :  { %v1077_v62 = vpop.f32.mrb[25].mxu1 }
 0x1e7   :  { %v717_v63 = vpop.f32.mrb[26].mxu1 }
 0x1e8   :  { %v721_v1 = vpack.c.bf16 %v717_v63, %v714_v61  ;;  %v1078_v2 = vpop.f32.mrb[27].mxu1 }
 0x1ea   :  { %1082 = vmatmul.mubr.msk.bf16.vlgmr.msra.gmra.mrb[24].mxu0 %vm92_vm3, %v721_v1 }
 0x1eb   :  { %1094 = vmatpush3.bf16.msra.mxu0 %v1168_v5  ;;  %1095 = vmatprep.mubr.msk.bf16.mxu0 %vm1120_vm1, %v1119_v0 }
 0x1ed   :  { %v819_v3 = vpop.f32.mrb[28].mxu1 }
 0x1ee   :  { %v1091_v4 = vpop.f32.mrb[29].mxu1 }
 0x1ef   :  { %v822_v6 = vpop.f32.mrb[30].mxu1 }
 0x1f0   :  { %v826_v7 = vpack.c.bf16 %v822_v6, %v819_v3  ;;  %v1092_v8 = vpop.f32.mrb[31].mxu1 }
 0x1f2   :  { %1096 = vmatmul.mubr.msk.bf16.vlgmr.msra.gmra.mrb[28].mxu0 %vm92_vm3, %v826_v7 }
 0x295   :  { %v234_v9 = vpop.f32.mrb[4].mxu0 }
 0x296   :  { %891 = vst [vmem:[%s1346_s3 + $0x10] sm:$0xff] %v234_v9  ;;  %v1013_v10 = vpop.f32.mrb[5].mxu0 }
 0x297   :  { %v237_v11 = vpop.f32.mrb[6].mxu0 }
 0x298   :  { %892 = vst [vmem:[%s1346_s3 + $0x18] sm:$0xf] %v237_v11  ;;  %v1014_v5 = vpop.f32.mrb[7].mxu0 }
 0x29d   :  { %v339_v0 = vpop.f32.mrb[8].mxu0 }
 0x29e   :  { %900 = vst [vmem:[%s1346_s3 + $0x20] sm:$0xff] %v339_v0  ;;  %v1027_v12 = vpop.f32.mrb[9].mxu0 }
 0x29f   :  { %v342_v13 = vpop.f32.mrb[10].mxu0 }
 0x2a0   :  { %901 = vst [vmem:[%s1346_s3 + $0x28] sm:$0xf] %v342_v13  ;;  %v1028_v14 = vpop.f32.mrb[11].mxu0 }
 0x2a5   :  { %v444_v15 = vpop.f32.mrb[12].mxu0 }
 0x2a6   :  { %909 = vst [vmem:[%s1346_s3 + $0x30] sm:$0xff] %v444_v15  ;;  %v1041_v16 = vpop.f32.mrb[13].mxu0 }
 0x2a7   :  { %v447_v17 = vpop.f32.mrb[14].mxu0 }
 0x2a8   :  { %910 = vst [vmem:[%s1346_s3 + $0x38] sm:$0xf] %v447_v17  ;;  %v1042_v18 = vpop.f32.mrb[15].mxu0 }
 0x2ad   :  { %v549_v19 = vpop.f32.mrb[16].mxu0 }
 0x2ae   :  { %918 = vst [vmem:[%s1346_s3 + $0x40] sm:$0xff] %v549_v19  ;;  %v1055_v20 = vpop.f32.mrb[17].mxu0 }
 0x2af   :  { %v552_v21 = vpop.f32.mrb[18].mxu0 }
 0x2b0   :  { %919 = vst [vmem:[%s1346_s3 + $0x48] sm:$0xf] %v552_v21  ;;  %v1056_v22 = vpop.f32.mrb[19].mxu0 }
 0x2b5   :  { %v654_v23 = vpop.f32.mrb[20].mxu0 }
 0x2b6   :  { %927 = vst [vmem:[%s1346_s3 + $0x50] sm:$0xff] %v654_v23  ;;  %v1069_v24 = vpop.f32.mrb[21].mxu0 }
 0x2b7   :  { %v657_v25 = vpop.f32.mrb[22].mxu0 }
 0x2b8   :  { %928 = vst [vmem:[%s1346_s3 + $0x58] sm:$0xf] %v657_v25  ;;  %v1070_v26 = vpop.f32.mrb[23].mxu0 }
 0x2bd   :  { %v759_v27 = vpop.f32.mrb[24].mxu0 }
 0x2be   :  { %936 = vst [vmem:[%s1346_s3 + $0x60] sm:$0xff] %v759_v27  ;;  %v1083_v28 = vpop.f32.mrb[25].mxu0 }
 0x2bf   :  { %v762_v29 = vpop.f32.mrb[26].mxu0 }
 0x2c0   :  { %937 = vst [vmem:[%s1346_s3 + $0x68] sm:$0xf] %v762_v29  ;;  %v1084_v30 = vpop.f32.mrb[27].mxu0 }
 0x2c5   :  { %v864_v31 = vpop.f32.mrb[28].mxu0 }
 0x2c6   :  { %945 = vst [vmem:[%s1346_s3 + $0x70] sm:$0xff] %v864_v31  ;;  %v1097_v32 = vpop.f32.mrb[29].mxu0 }
 0x2c7   :  { %v867_v33 = vpop.f32.mrb[30].mxu0 }
 0x2c8   :  { %946 = vst [vmem:[%s1346_s3 + $0x78] sm:$0xf] %v867_v33  ;;  %v1098_v34 = vpop.f32.mrb[31].mxu0 }

</bundles_post_ra>
